<compile_context>
chip_gen: v7x
topology: tpu7x:2x2x1
jax: 0.10.0
libtpu: 0.0.40
codegen_flags: <defaults>
</compile_context>

<pallas_src>
import functools

import jax
import jax.numpy as jnp
from jax.experimental import pallas as pl
from jax.experimental.pallas import tpu as pltpu

BN_EPS = 1e-5
LANE = 128
_VMEM_LIMIT = 48 * 1024 * 1024  # < v7x's 64 MiB physical, fine on v5e/v6e too


def _round_up(v, m):
    return (v + m - 1) // m * m


def _pad_to(a, shape):
    pads = [(0, t - s) for s, t in zip(a.shape, shape)]
    if all(p == (0, 0) for p in pads):
        return a
    return jnp.pad(a, pads)


# ----------------------------------------------------------------------------
# Kernels
# ----------------------------------------------------------------------------
def _stage1_kernel(x_ref, w1_ref, h_ref, s1_ref):
    """h = x @ w1 (bf16 operands, f32 acc); accumulate per-feature sum/sumsq."""
    h = jnp.dot(x_ref[...], w1_ref[...], preferred_element_type=jnp.float32)
    h_ref[...] = h

    @pl.when(pl.program_id(0) == 0)
    def _():
        s1_ref[...] = jnp.zeros_like(s1_ref)

    s = jnp.concatenate(
        [jnp.sum(h, axis=0, keepdims=True),
         jnp.sum(h * h, axis=0, keepdims=True)], axis=0)
    s1_ref[...] += s


def _stage2_kernel(inv_n, h_ref, s1_ref, aff1_ref, w2_ref, y_ref, s2_ref):
    """z = relu(bn1(h)); y = z @ w2; accumulate per-feature sum/sumsq of y."""
    h = h_ref[...]                                          # (tile_n, C) f32
    mean = s1_ref[0:1, :] * inv_n                           # (1, C)
    var = jnp.maximum(s1_ref[1:2, :] * inv_n - mean * mean, 0.0)
    inv_std = jax.lax.rsqrt(var + BN_EPS)
    z = aff1_ref[0:1, :] * (h - mean) * inv_std + aff1_ref[1:2, :]
    z = jnp.maximum(z, 0.0)                                 # ReLU
    y = jnp.dot(z.astype(jnp.bfloat16), w2_ref[...],
                preferred_element_type=jnp.float32)
    y_ref[...] = y

    @pl.when(pl.program_id(0) == 0)
    def _():
        s2_ref[...] = jnp.zeros_like(s2_ref)

    s = jnp.concatenate(
        [jnp.sum(y, axis=0, keepdims=True),
         jnp.sum(y * y, axis=0, keepdims=True)], axis=0)
    s2_ref[...] += s


def _stage3_kernel(inv_n, y_ref, s2_ref, aff2_ref, o_ref):
    """out = bn2(y) -- pure elementwise epilogue."""
    y = y_ref[...]
    mean = s2_ref[0:1, :] * inv_n
    var = jnp.maximum(s2_ref[1:2, :] * inv_n - mean * mean, 0.0)
    inv_std = jax.lax.rsqrt(var + BN_EPS)
    o_ref[...] = (aff2_ref[0:1, :] * (y - mean) * inv_std
                  + aff2_ref[1:2, :]).astype(o_ref.dtype)


# ----------------------------------------------------------------------------
# Wrapper
# ----------------------------------------------------------------------------
def proj_head_forward(x, params, *, tile_n=None):
    n, c = x.shape
    c_out = params["w2"].shape[1]
    cp = _round_up(c, LANE)
    op = _round_up(c_out, LANE)

    # Choose a batch tile that divides N exactly (no padded rows -> BN stats
    # stay exact over the true batch).
    if tile_n is None:
        tile_n = n
        for cand in (512, 256, 128, 64, 32, 16, 8):
            if n % cand == 0:
                tile_n = cand
                break
    assert n % tile_n == 0, "batch must be divisible by tile_n"
    n_tiles = n // tile_n

    # Lane-dense padding + bf16 matmul operands.
    xb = _pad_to(x.astype(jnp.bfloat16), (n, cp))
    w1 = _pad_to(params["w1"].astype(jnp.bfloat16), (cp, cp))
    w2 = _pad_to(params["w2"].astype(jnp.bfloat16), (cp, op))
    aff1 = _pad_to(jnp.stack([params["g1"], params["be1"]], axis=0)
                   .astype(jnp.float32), (2, cp))
    aff2 = _pad_to(jnp.stack([params["g2"], params["be2"]], axis=0)
                   .astype(jnp.float32), (2, op))
    # NOTE: params["b1"] is intentionally NOT used: train-mode bn1 subtracts
    # the batch mean, which cancels any per-feature constant, so fc1's bias
    # has no effect on the output (saves a VPU add and a DMA).

    inv_n = 1.0 / n
    cp_acc = pltpu.CompilerParams(
        dimension_semantics=("arbitrary",),     # stats accumulate across tiles
        vmem_limit_bytes=_VMEM_LIMIT)
    cp_par = pltpu.CompilerParams(
        dimension_semantics=("parallel",),      # independent epilogue tiles
        vmem_limit_bytes=_VMEM_LIMIT)

    tile_c = pl.BlockSpec((tile_n, cp), lambda i: (i, 0))   # batch tile, C feat
    tile_o = pl.BlockSpec((tile_n, op), lambda i: (i, 0))   # batch tile, O feat
    res_w1 = pl.BlockSpec((cp, cp), lambda i: (0, 0))       # resident weights
    res_w2 = pl.BlockSpec((cp, op), lambda i: (0, 0))
    res_c2 = pl.BlockSpec((2, cp), lambda i: (0, 0))        # resident (2, C)
    res_o2 = pl.BlockSpec((2, op), lambda i: (0, 0))        # resident (2, O)

    # --- stage 1: fc1 + bn1-stats accumulation ------------------------------
    h, s1 = pl.pallas_call(
        _stage1_kernel,
        grid=(n_tiles,),
        in_specs=[tile_c, res_w1],
        out_specs=(tile_c, res_c2),
        out_shape=(jax.ShapeDtypeStruct((n, cp), jnp.float32),
                   jax.ShapeDtypeStruct((2, cp), jnp.float32)),
        compiler_params=cp_acc,
    )(xb, w1)

    # --- stage 2: bn1 + relu + fc2 + bn2-stats accumulation ------------------
    y, s2 = pl.pallas_call(
        functools.partial(_stage2_kernel, inv_n),
        grid=(n_tiles,),
        in_specs=[tile_c, res_c2, res_c2, res_w2],
        out_specs=(tile_o, res_o2),
        out_shape=(jax.ShapeDtypeStruct((n, op), jnp.float32),
                   jax.ShapeDtypeStruct((2, op), jnp.float32)),
        compiler_params=cp_acc,
    )(h, s1, aff1, w2)

    # --- stage 3: bn2 epilogue ----------------------------------------------
    out = pl.pallas_call(
        functools.partial(_stage3_kernel, inv_n),
        grid=(n_tiles,),
        in_specs=[tile_o, res_o2, res_o2],
        out_specs=tile_o,
        out_shape=jax.ShapeDtypeStruct((n, op), x.dtype),
        compiler_params=cp_par,
    )(y, s2, aff2)

    return out[:, :c_out]


# ----------------------------------------------------------------------------
# Reference + params
# ----------------------------------------------------------------------------
def _bn_train_ref(h, gamma, beta):
    mean = jnp.mean(h, axis=0, keepdims=True)
    var = jnp.mean((h - mean) ** 2, axis=0, keepdims=True)
    return gamma * (h - mean) * jax.lax.rsqrt(var + BN_EPS) + beta


def proj_head_ref(x, p, matmul_dtype=jnp.float32):
    """Pure-JAX reference with PyTorch forward semantics (includes b1).

    matmul_dtype=bfloat16 mirrors the kernel's MXU operand precision
    (f32 accumulation) for a tight numerical comparison."""
    cast = lambda a: a.astype(matmul_dtype)
    h = jnp.dot(cast(x), cast(p["w1"]),
                preferred_element_type=jnp.float32) + p["b1"]
    h = _bn_train_ref(h, p["g1"], p["be1"])
    h = jnp.maximum(h, 0.0)
    y = jnp.dot(cast(h), cast(p["w2"]), preferred_element_type=jnp.float32)
    return _bn_train_ref(y, p["g2"], p["be2"])


def init_params(key, ch, output_cnt=None):
    """Deterministic synthetic parameters (shapes match proj_head.__init__)."""
    if output_cnt is None:
        output_cnt = ch
    k1, k2, k3, k4, k5 = jax.random.split(key, 5)
    # Linear weights stored (in, out) -- i.e. PyTorch weight.T
    w1 = jax.random.normal(k1, (ch, ch), jnp.float32) * 0.1
    b1 = jax.random.normal(k2, (1, ch), jnp.float32) * 0.1
    w2 = jax.random.normal(k3, (ch, output_cnt), jnp.float32) * 0.1
    # non-trivial BN affine params to make the check meaningful
    g1 = 1.0 + 0.1 * jax.random.normal(k4, (ch,), jnp.float32)
    be1 = 0.1 * jax.random.normal(k5, (ch,), jnp.float32)
    g2 = 1.0 + 0.1 * jax.random.normal(jax.random.fold_in(k4, 1),
                                       (output_cnt,), jnp.float32)
    be2 = 0.1 * jax.random.normal(jax.random.fold_in(k5, 1),
                                  (output_cnt,), jnp.float32)
    return dict(w1=w1, b1=b1, g1=g1, be1=be1, w2=w2, g2=g2, be2=be2)


if __name__ == "__main__":
    key = jax.random.PRNGKey(0)
    kx, kp, kx2 = jax.random.split(key, 3)

    # Case 1: lane-dense shapes, batch tiled over a 2-step grid.
    N, CH, OUT = 256, 128, 128
    x = jax.random.normal(kx, (N, CH), jnp.float32)
    params = init_params(kp, CH, OUT)
    out = jax.block_until_ready(proj_head_forward(x, params, tile_n=128))
    assert out.shape == (N, OUT)
    ref_bf16 = proj_head_ref(x, params, matmul_dtype=jnp.bfloat16)
    ref_f32 = proj_head_ref(x, params, matmul_dtype=jnp.float32)
    assert float(jnp.max(jnp.abs(out - ref_bf16))) < 1e-2   # precision-matched
    assert float(jnp.max(jnp.abs(out - ref_f32))) < 1.5e-1  # full-f32 semantics

    # Case 2: non-lane-aligned features -> wrapper pads to 128 and slices back.
    N2, CH2, OUT2 = 64, 96, 48
    x2 = jax.random.normal(kx2, (N2, CH2), jnp.float32)
    params2 = init_params(jax.random.fold_in(kp, 7), CH2, OUT2)
    out2 = jax.block_until_ready(proj_head_forward(x2, params2))
    assert out2.shape == (N2, OUT2)
    ref2 = proj_head_ref(x2, params2, matmul_dtype=jnp.bfloat16)
    assert float(jnp.max(jnp.abs(out2 - ref2))) < 1e-2

    print("KERNEL_OK")
</pallas_src>

<mosaic_0001>
module attributes {stable_mosaic.version = 11 : i64} {
  func.func @_stage1_kernel(%arg0: i32, %arg1: memref<128x128xbf16, #tpu.memory_space<vmem>>, %arg2: memref<128x128xbf16, #tpu.memory_space<vmem>>, %arg3: memref<128x128xf32, #tpu.memory_space<vmem>>, %arg4: memref<2x128xf32, #tpu.memory_space<vmem>>) attributes {dimension_semantics = [#tpu.dimension_semantics<arbitrary>], iteration_bounds = array<i64: 2>, scalar_prefetch = 0 : i64, scratch_operands = 0 : i64, tpu.core_type = #tpu.core_type<tc>, window_params = [{transform_indices = @transform_0, window_bounds = array<i64: 128, 128>}, {pipeline_mode = #tpu.pipeline_mode<synchronous>, transform_indices = @transform_1, window_bounds = array<i64: 128, 128>}, {transform_indices = @transform_2, window_bounds = array<i64: 128, 128>}, {pipeline_mode = #tpu.pipeline_mode<synchronous>, transform_indices = @transform_3, window_bounds = array<i64: 2, 128>}]} {
    %c0 = arith.constant 0 : index
    %c0_0 = arith.constant 0 : index
    %0 = vector.load %arg1[%c0, %c0_0] : memref<128x128xbf16, #tpu.memory_space<vmem>>, vector<128x128xbf16>
    %c0_1 = arith.constant 0 : index
    %c0_2 = arith.constant 0 : index
    %1 = vector.load %arg2[%c0_1, %c0_2] : memref<128x128xbf16, #tpu.memory_space<vmem>>, vector<128x128xbf16>
    %cst = arith.constant dense<0.000000e+00> : vector<128x128xf32>
    %2 = tpu.matmul %0, %1, %cst {dimension_numbers = #tpu.dot_dimension_numbers<[1], [0], [0], [1], [0, 0, 1, 1], [], []>} : vector<128x128xbf16>, vector<128x128xbf16>, vector<128x128xf32> -> vector<128x128xf32>
    %c0_3 = arith.constant 0 : index
    %c0_4 = arith.constant 0 : index
    %3 = vector.load %arg3[%c0_3, %c0_4] : memref<128x128xf32, #tpu.memory_space<vmem>>, vector<128x128xf32>
    tpu.vector_store %arg3[%c0_3, %c0_4], %2 {strides = array<i32>} : memref<128x128xf32, #tpu.memory_space<vmem>>, vector<128x128xf32>,
    %c0_i32 = arith.constant 0 : i32
    %4 = arith.cmpi eq, %arg0, %c0_i32 : i32
    %5 = arith.extui %4 : i1 to i32
    %c0_i32_5 = arith.constant 0 : i32
    %6 = arith.cmpi ne, %5, %c0_i32_5 : i32
    scf.if %6 {
      %cst_12 = arith.constant 0.000000e+00 : f32
      %16 = vector.broadcast %cst_12 : f32 to vector<2x128xf32>
      %c0_13 = arith.constant 0 : index
      %c0_14 = arith.constant 0 : index
      %17 = vector.load %arg4[%c0_13, %c0_14] : memref<2x128xf32, #tpu.memory_space<vmem>>, vector<2x128xf32>
      tpu.vector_store %arg4[%c0_13, %c0_14], %16 {strides = array<i32>} : memref<2x128xf32, #tpu.memory_space<vmem>>, vector<2x128xf32>,
    } else {
    }
    %cst_6 = arith.constant dense<0.000000e+00> : vector<128xf32>
    %7 = vector.multi_reduction <add>, %2, %cst_6 [0] : vector<128x128xf32> to vector<128xf32>
    %8 = vector.shape_cast %7 : vector<128xf32> to vector<1x128xf32>
    %9 = arith.mulf %2, %2 : vector<128x128xf32>
    %cst_7 = arith.constant dense<0.000000e+00> : vector<128xf32>
    %10 = vector.multi_reduction <add>, %9, %cst_7 [0] : vector<128x128xf32> to vector<128xf32>
    %11 = vector.shape_cast %10 : vector<128xf32> to vector<1x128xf32>
    %12 = tpu.concatenate %8, %11 in 0 : vector<1x128xf32>, vector<1x128xf32> -> vector<2x128xf32>
    %c0_8 = arith.constant 0 : index
    %c0_9 = arith.constant 0 : index
    %13 = vector.load %arg4[%c0_8, %c0_9] : memref<2x128xf32, #tpu.memory_space<vmem>>, vector<2x128xf32>
    %14 = arith.addf %13, %12 : vector<2x128xf32>
    %c0_10 = arith.constant 0 : index
    %c0_11 = arith.constant 0 : index
    %15 = vector.load %arg4[%c0_10, %c0_11] : memref<2x128xf32, #tpu.memory_space<vmem>>, vector<2x128xf32>
    tpu.vector_store %arg4[%c0_10, %c0_11], %14 {strides = array<i32>} : memref<2x128xf32, #tpu.memory_space<vmem>>, vector<2x128xf32>,
    return
  }
  func.func @transform_0(%arg0: i32) -> (i32, i32) {
    %c0_i32 = arith.constant 0 : i32
    %c0_i32_0 = arith.constant 0 : i32
    return %arg0, %c0_i32 : i32, i32
  }
  func.func @transform_1(%arg0: i32) -> (i32, i32) {
    %c0_i32 = arith.constant 0 : i32
    %c0_i32_0 = arith.constant 0 : i32
    %c0_i32_1 = arith.constant 0 : i32
    return %c0_i32, %c0_i32_0 : i32, i32
  }
  func.func @transform_2(%arg0: i32) -> (i32, i32) {
    %c0_i32 = arith.constant 0 : i32
    %c0_i32_0 = arith.constant 0 : i32
    return %arg0, %c0_i32 : i32, i32
  }
  func.func @transform_3(%arg0: i32) -> (i32, i32) {
    %c0_i32 = arith.constant 0 : i32
    %c0_i32_0 = arith.constant 0 : i32
    %c0_i32_1 = arith.constant 0 : i32
    return %c0_i32, %c0_i32_0 : i32, i32
  }
}

</mosaic_0001>

<bundles_post_ra>
// kernel: tpu_custom_call.1
= control target key start
LH: loop header
LB: loop body
LE: loop exit
PB: predicated region body
PF: predicated region fallthrough
CT: control target
= control target key end

     0   :  { %9 = vsyncpa [#allocation3], 0  ;;  %s1325_s0 = inlined_call_operand.hbm [shape: bf16[256,128], index: 0, kind: input, shape index: {}]   ;;  %s1326_s1 = inlined_call_operand.hbm [shape: bf16[128,128], index: 1, kind: input, shape index: {}]   ;;  %s1327_s2 = inlined_call_operand.hbm [shape: f32[256,128], index: 2, kind: output, shape index: {0}]   ;;  %s1328_s3 = inlined_call_operand.hbm [shape: f32[2,128], index: 3, kind: output, shape index: {1}]  }
   0x1   :  { %11 = vsyncpa [#allocation3 + $0x1], 0 }
   0x2   :  { %12 = vsyncpa [#allocation6], 0 }
   0x3   :  { %13 = vsyncpa [#allocation4], 0 }
   0x4   :  { %15 = vsyncpa [#allocation4 + $0x1], 0 }
   0x5   :  { %16 = vsyncpa [#allocation9], 0  ;;  %s1009_s12 = smov 0   ;;  %s1011_s13 = smov 0  }
   0x6   :  { %s1013_s14 = smov 0   ;;  %s1015_s15 = smov 0  }
   0x7 LB: > { %s1030_s16 = sadd.s32 4294967295, %s978_s15   ;;  %s634_s17 = sadd.s32 4294967294, %s978_s15   ;;  %s978_s15 = sphi %s1015_s15, %s1354_s15   ;;  %s974_s14 = sphi %s1013_s14, %s1353_s14   ;;  %s970_s13 = sphi %s1011_s13, %s1352_s13   ;;  %s966_s12 = sphi %s1009_s12, %s1351_s12  }
   0x8   : > { %p42_p0 = scmp.ne.s32.totalorder %s970_s13, %s966_s12  ;;  %p1329_p1 = scmp.eq.s32.totalorder %s1030_s16, 0 }
   0x9   : > { %p93_p3 = scmp.eq.s32.totalorder %s634_s17, 1  ;;  %p635_p5 = scmp.ge.s32.totalorder %s978_s15, 1 }
   0xa   : > { %p1039_p4 = por %p1329_p1, %p42_p0  ;;  %p121_p7 = scmp.lt.s32.totalorder %s978_s15, 3 }
   0xb   : > { %p1044_p6 = por %p93_p3, %p42_p0  ;;  %s980_s21 = smov [#allocation5]  }
   0xc   : > { %s1332_s18 = scalar_select %p1039_p4, 1, 0 }
   0xd   : > { %s1333_s19 = scalar_select %p1044_p6, 1, 0 }
   0xe   : > { %p1050_p9 = pnand %p635_p5, %p121_p7  ;;  %s133_s22 = sshll.u32 %s980_s21, 4  ;;  %s1054_s22 = int_to_ptr.vmem [resolvable:$true] %s133_s22 }
   0xf   : > { %s1066_s24 = sadd.s32 1, %s978_s15   ;;  %s29_s25 = sadd.s32 1, %s974_s14 }
  0x10   : > { %s1334_s20 = scalar_select %p1050_p9, 1, 0 }
  0x11   : > { %p747_p10 = pneg %p1050_p9  ;;  %s26_s26 = ssub.s32 %s978_s15, %s1066_s24 }
  0x12   : > { %s820_s29 = scalar_lea.hbm %s1326_s1, 1024 }
  0x13   : > { %p1061_p12 = pnand %p747_p10, %p1329_p1  ;;  %p821_p13 = scmp.ne.s32.totalorder %s1326_s1, %s820_s29 }
  0x14   : > { %p827_p7 = scmp.lt.u32.totalorder %s820_s29, %s1326_s1 }
  0x15   : > { %p822_p0 = pneg %p1061_p12 }
  0x17   : > { %p823_p3 = pnand %p822_p0, %p821_p13 }
  0x19   : > { %p824_p5 = pneg %p823_p3 }
  0x1b   : > { %p829_p10 = pnand %p827_p7, %p824_p5 }
  0x1d   : > { %832 = shalt.err (!%p829_p10)
}
  0x1e   : > { %s833_s7 = scalar_lea.vmem %s1054_s22, 1024  ;;  %p841_p2 = scmp.lt.s32.totalorder %s1054_s22, %s1054_s22 }
  0x1f   : > { %p834_p11 = scmp.ne.s32.totalorder %s1054_s22, %s833_s7  ;;  %p842_p6 = scmp.lt.s32.totalorder %s833_s7, %s833_s7 }
  0x21   : > { %p836_p8 = pnand %p834_p11, %p822_p0  ;;  %p843_p4 = por %p842_p6, %p841_p2 }
  0x23   : > { %p837_p1 = pneg %p836_p8 }
  0x25   : > { %p844_p9 = pnand %p843_p4, %p837_p1 }
  0x27   : > { %847 = shalt.err (!%p844_p9)
}
  0x28   : > { %s981_s8 = smov 64   ;;  %s982_s9 = smov 4  }
  0x29   : > { %750 = dma.hbm_to_vmem [thread:$0]  (!%p1061_p12), %s1326_s1, 1024, %s1054_s22, [#allocation6], %s981_s8, %s981_s8, %s982_s9  }
  0x2a   : > { %p27_p1 = scmp.eq.s32.totalorder %s26_s26, 0  ;;  %p36_p2 = scmp.ne.s32.totalorder %s974_s14, %s970_s13 }
  0x2b   : > { %p37_p4 = scmp.eq.s32.totalorder %s978_s15, 0  ;;  %p760_p6 = scmp.lt.s32.totalorder %s978_s15, 2 }
  0x2c   : > { %s1100_s17 = scalar_select %p27_p1, %s974_s14, %s29_s25  }
  0x2d   : > { %p38_p8 = por %p37_p4, %p36_p2  ;;  %p1336_p9 = scmp.eq.s32.totalorder %s1030_s16, 1 }
  0x2e   : > { %s147_s23 = sand.u32 1, %s974_s14   ;;  %s669_s27 = sshll.u32 %s978_s15, 10 }
  0x2f   : > { %p1104_p11 = por %p1336_p9, %p36_p2  ;;  %s638_s28 = sshll.u32 %s147_s23, 6 }
  0x30   : > { %s1113_s4 = scalar_lea.hbm %s1325_s0, %s669_s27  ;;  %s151_s22 = scalar_lea.vmem [#allocation2], %s638_s28 }
  0x31   : > { %s158_s25 = sshll.u32 %s151_s22, 4  ;;  %p1115_p12 = pnand %p760_p6, %p38_p8  ;;  %s1119_s25 = int_to_ptr.vmem [resolvable:$true] %s158_s25 }
  0x32   : > { %s1121_s5 = scalar_lea.sflag [#allocation3], %s147_s23  ;;  %s848_s6 = scalar_lea.hbm %s1113_s4, 1024 }
  0x33   : > { %p849_p13 = scmp.ne.s32.totalorder %s1113_s4, %s848_s6  ;;  %p850_p0 = pneg %p1115_p12 }
  0x34   : > { %s853_s11 = scalar_lea.hbm %s1325_s0, 2048  ;;  %p854_p7 = scmp.lt.u32.totalorder %s1113_s4, %s1325_s0 }
  0x35   : > { %p851_p3 = pnand %p850_p0, %p849_p13  ;;  %p855_p10 = scmp.lt.u32.totalorder %s853_s11, %s848_s6 }
  0x36   : > { %p857_p2 = scmp.lt.u32.totalorder %s848_s6, %s1113_s4 }
  0x37   : > { %p852_p5 = pneg %p851_p3  ;;  %p856_p1 = por %p855_p10, %p854_p7 }
  0x39   : > { %p858_p4 = por %p857_p2, %p856_p1 }
  0x3b   : > { %p859_p6 = pnand %p858_p4, %p852_p5 }
  0x3d   : > { %862 = shalt.err (!%p859_p6)
}
  0x3e   : > { %s863_s23 = scalar_lea.vmem %s1119_s25, 1024  ;;  %s983_s29 = smov [#allocation2]  }
  0x3f   : > { %p864_p8 = scmp.ne.s32.totalorder %s1119_s25, %s863_s23  ;;  %s868_s30 = sshll.u32 %s983_s29, 4  ;;  %s869_s30 = int_to_ptr.vmem [resolvable:$false] %s868_s30 }
  0x40   : > { %s870_s22 = scalar_lea.vmem %s869_s30, 2048  ;;  %p871_p3 = scmp.lt.s32.totalorder %s1119_s25, %s869_s30 }
  0x41   : > { %p866_p9 = pnand %p864_p8, %p850_p0  ;;  %p872_p7 = scmp.lt.s32.totalorder %s870_s22, %s863_s23 }
  0x43   : > { %p867_p13 = pneg %p866_p9  ;;  %p873_p10 = por %p872_p7, %p871_p3 }
  0x45   : > { %p874_p1 = pnand %p873_p10, %p867_p13 }
  0x47   : > { %877 = shalt.err (!%p874_p1)
}
  0x48   : > { %754 = dma.hbm_to_vmem [thread:$0]  (!%p1115_p12), %s1113_s4, 1024, %s1119_s25, %s1121_s5, %s981_s8, %s981_s8, %s982_s9  }
  0x49   : > { %p1339_p0 = scmp.ne.s32.totalorder %s1334_s20, 0 }
  0x4a   : > { %s1155_s6 = sand.u32 (!%p1339_p0), 1, %s970_s13   ;;  %p1340_p5 = scmp.ne.s32.totalorder (!%p1339_p0), %s1332_s18, 0 }
  0x4b   : > { %170 = sbr.rel (%p1339_p0) target bundleno = 427 (0x1ab), region = 28  ;;  %s642_s7 = sshll.u32 (!%p1339_p0), %s1155_s6, 6 }
  0x4c   : > { %s173_s10 = scalar_lea.sflag (!%p1339_p0), [#allocation3], %s1155_s6  ;;  %s1159_s11 = scalar_lea.vmem (!%p1339_p0), [#allocation2], %s642_s7 }
  0x52   : > { %949 = dma.done.wait (%p1340_p5), %s173_s10, 1024  }
  0x53   : > { %951 = vsyncadd (%p1340_p5), %s173_s10, 4294966272  ;;  %p1341_p12 = scmp.eq.s32.totalorder %s1030_s16, 0 }
  0x55   : > { %953 = dma.done.wait (%p1341_p12), [#allocation6], 1024   ;;  %p1342_p2 = pmov %p1341_p12 }
  0x56   : > { %v804_v0 = vld [vmem:[#allocation5] sm:$0xff]   ;;  %v805_v1 = vld [vmem:[#allocation5 + $0x8] sm:$0xff]   ;;  %v806_v2 = vld [vmem:[#allocation5 + $0x10] sm:$0xff]   ;;  %s644_s18 = sshll.u32 %s1155_s6, 7  ;;  %p1343_p4 = scmp.ne.s32.totalorder %s1030_s16, 0 }
  0x57   : > { %955 = vsyncadd (%p1342_p2), [#allocation6], 4294966272  ;;  %687 = vmatprep.subr.bf16.mxu0 %v804_v0  ;;  %719 = vmatprep.subr.bf16.mxu1 %v804_v0  ;;  %v807_v3 = vld [vmem:[#allocation5 + $0x18] sm:$0xff]   ;;  %v812_v4 = vld [vmem:[%s1159_s11] sm:$0xff]   ;;  %s1180_s20 = scalar_lea.vmem [#allocation7], %s644_s18  ;;  %v984_v32 = vmov (!%p1343_p4), 0.0  }
  0x58   : > { %688 = vmatpush3.bf16.msra.mxu0 %v804_v0  ;;  %727 = vmatpush3.bf16.msra.mxu1 %v804_v0  ;;  %v813_v5 = vld [vmem:[%s1159_s11 + $0x20] sm:$0xff]   ;;  %v809_v7 = vld [vmem:[#allocation5 + $0x28] sm:$0xff]   ;;  %v810_v8 = vld [vmem:[#allocation5 + $0x30] sm:$0xff]   ;;  %451 = vst [vmem:[#allocation8] sm:$0x3] (!%p1343_p4), %v984_v32 }
  0x59   : > { %689 = vmatprep.subr.bf16.mxu0 %v805_v1  ;;  %720 = vmatprep.subr.bf16.mxu1 %v805_v1  ;;  %v808_v6 = vld [vmem:[#allocation5 + $0x20] sm:$0xff]   ;;  %v811_v9 = vld [vmem:[#allocation5 + $0x38] sm:$0xff]   ;;  %v814_v10 = vld [vmem:[%s1159_s11 + $0x8] sm:$0xff]  }
  0x5a   : > { %703 = vmatprep.mubr.bf16.mxu0 %v812_v4  ;;  %711 = vmatprep.mubr.bf16.mxu1 %v813_v5  ;;  %v815_v11 = vld [vmem:[%s1159_s11 + $0x28] sm:$0xff]   ;;  %v816_v12 = vld [vmem:[%s1159_s11 + $0x10] sm:$0xff]   ;;  %v818_v14 = vld [vmem:[%s1159_s11 + $0x18] sm:$0xff]  }
  0x5b   : > { %v817_v13 = vld [vmem:[%s1159_s11 + $0x30] sm:$0xff]   ;;  %v819_v15 = vld [vmem:[%s1159_s11 + $0x38] sm:$0xff]  }
  0x5c   : > { %690 = vmatpush3.bf16.msra.mxu0 %v805_v1  ;;  %728 = vmatpush3.bf16.msra.mxu1 %v805_v1 }
  0x5d   : > { %691 = vmatprep.subr.bf16.mxu0 %v806_v2  ;;  %721 = vmatprep.subr.bf16.mxu1 %v806_v2 }
  0x60   : > { %692 = vmatpush3.bf16.msra.mxu0 %v806_v2  ;;  %729 = vmatpush3.bf16.msra.mxu1 %v806_v2 }
  0x61   : > { %693 = vmatprep.subr.bf16.mxu0 %v807_v3  ;;  %722 = vmatprep.subr.bf16.mxu1 %v807_v3 }
  0x64   : > { %694 = vmatpush3.bf16.msra.mxu0 %v807_v3  ;;  %730 = vmatpush3.bf16.msra.mxu1 %v807_v3 }
  0x65   : > { %695 = vmatprep.subr.bf16.mxu0 %v808_v6  ;;  %723 = vmatprep.subr.bf16.mxu1 %v808_v6 }
  0x68   : > { %696 = vmatpush3.bf16.msra.mxu0 %v808_v6  ;;  %731 = vmatpush3.bf16.msra.mxu1 %v808_v6 }
  0x69   : > { %697 = vmatprep.subr.bf16.mxu0 %v809_v7  ;;  %724 = vmatprep.subr.bf16.mxu1 %v809_v7 }
  0x6c   : > { %698 = vmatpush3.bf16.msra.mxu0 %v809_v7  ;;  %732 = vmatpush3.bf16.msra.mxu1 %v809_v7 }
  0x6d   : > { %699 = vmatprep.subr.bf16.mxu0 %v810_v8  ;;  %725 = vmatprep.subr.bf16.mxu1 %v810_v8 }
  0x70   : > { %700 = vmatpush3.bf16.msra.mxu0 %v810_v8  ;;  %733 = vmatpush3.bf16.msra.mxu1 %v810_v8 }
  0x71   : > { %701 = vmatprep.subr.bf16.mxu0 %v811_v9  ;;  %726 = vmatprep.subr.bf16.mxu1 %v811_v9 }
  0x74   : > { %702 = vmatpush3.bf16.msra.mxu0 %v811_v9  ;;  %734 = vmatpush3.bf16.msra.mxu1 %v811_v9 }
  0x77   : > { %704 = vmatmul.mubr.bf16.vlgmr.msra.gmra.mrb[0].mxu0 %v814_v10  ;;  %712 = vmatmul.mubr.bf16.vlgmr.msra.gmra.mrb[0].mxu1 %v815_v11 }
  0x78   : > { %707 = vmatprep.mubr.bf16.mxu0 %v816_v12  ;;  %715 = vmatprep.mubr.bf16.mxu1 %v817_v13 }
  0x7f   : > { %708 = vmatmul.mubr.bf16.gmra.mrb[4].mxu0 %v818_v14  ;;  %716 = vmatmul.mubr.bf16.gmra.mrb[4].mxu1 %v819_v15 }
 0x14a   : > { %v705_v16 = vpop.f32.mrb[0].mxu0  ;;  %v1178_v17 = vpop.f32.mrb[0].mxu1 }
 0x14b   : > { %433 = vst [vmem:[%s1180_s20 + $0x10] sm:$0xff] %v705_v16  ;;  %441 = vst [vmem:[%s1180_s20 + $0x50] sm:$0xff] %v1178_v17  ;;  %v368_v18 = vpop.f32.mrb[1].mxu0  ;;  %v1185_v19 = vpop.f32.mrb[1].mxu1 }
 0x14c   : > { %431 = vst [vmem:[%s1180_s20] sm:$0xff] %v368_v18  ;;  %439 = vst [vmem:[%s1180_s20 + $0x40] sm:$0xff] %v1185_v19  ;;  %v706_v20 = vpop.f32.mrb[2].mxu0  ;;  %v1190_v21 = vpop.f32.mrb[2].mxu1 }
 0x14d   : > { %434 = vst [vmem:[%s1180_s20 + $0x18] sm:$0xff] %v706_v20  ;;  %442 = vst [vmem:[%s1180_s20 + $0x58] sm:$0xff] %v1190_v21  ;;  %v371_v22 = vpop.f32.mrb[3].mxu0  ;;  %v1195_v23 = vpop.f32.mrb[3].mxu1 }
 0x14e   : > { %432 = vst [vmem:[%s1180_s20 + $0x8] sm:$0xff] %v371_v22  ;;  %440 = vst [vmem:[%s1180_s20 + $0x48] sm:$0xff] %v1195_v23 }
 0x150   : > { %450 = sbr.rel (%p1343_p4) target bundleno = 343 (0x157), region = 40 }
 0x152   : > { %v1200_v24 = vpop.f32.mrb[4].mxu0  ;;  %v1202_v25 = vpop.f32.mrb[4].mxu1 }
 0x153   : > { %437 = vst [vmem:[%s1180_s20 + $0x30] sm:$0xff] %v1200_v24  ;;  %445 = vst [vmem:[%s1180_s20 + $0x70] sm:$0xff] %v1202_v25  ;;  %v384_v26 = vpop.f32.mrb[5].mxu0  ;;  %v1208_v27 = vpop.f32.mrb[5].mxu1 }
 0x154   : > { %435 = vst [vmem:[%s1180_s20 + $0x20] sm:$0xff] %v384_v26  ;;  %443 = vst [vmem:[%s1180_s20 + $0x60] sm:$0xff] %v1208_v27  ;;  %v710_v28 = vpop.f32.mrb[6].mxu0  ;;  %v1213_v29 = vpop.f32.mrb[6].mxu1 }
 0x155   : > { %438 = vst [vmem:[%s1180_s20 + $0x38] sm:$0xff] %v710_v28  ;;  %446 = vst [vmem:[%s1180_s20 + $0x78] sm:$0xff] %v1213_v29  ;;  %v387_v30 = vpop.f32.mrb[7].mxu0  ;;  %v1218_v31 = vpop.f32.mrb[7].mxu1 }
 0x156   : > { %436 = vst [vmem:[%s1180_s20 + $0x28] sm:$0xff] %v387_v30  ;;  %444 = vst [vmem:[%s1180_s20 + $0x68] sm:$0xff] %v1218_v31 }
 0x157 PF: > { %v452_v33 = vadd.f32 %v371_v22, %v368_v18  ;;  %v473_v34 = vmul.f32 %v368_v18, %v368_v18  ;;  %v474_v35 = vmul.f32 %v371_v22, %v371_v22  ;;  %s670_s8 = sshll.u32 %s1030_s16, 11  ;;  %s529_s26 = sshll.u32 %s1180_s20, 4  ;;  %v475_v37 = vmul.f32 %v705_v16, %v705_v16  ;;  %s1232_s26 = int_to_ptr.vmem [resolvable:$true] %s529_s26 }
 0x158   : > { %s1229_s25 = scalar_lea.hbm %s1327_s2, %s670_s8  ;;  %v476_v39 = vmul.f32 %v706_v20, %v706_v20  ;;  %s516_s5 = scalar_lea.sflag [#allocation4], %s1155_s6 }
 0x159   : > { %v453_v36 = vadd.f32 %v705_v16, %v452_v33  ;;  %v489_v40 = vadd.f32 %v474_v35, %v473_v34  ;;  %s878_s27 = scalar_lea.vmem %s1232_s26, 2048  ;;  %s985_s28 = smov [#allocation7]  }
 0x15a   : > { %p879_p6 = scmp.ne.s32.totalorder %s1232_s26, %s878_s27  ;;  %s882_s23 = sshll.u32 %s985_s28, 4  ;;  %s883_s23 = int_to_ptr.vmem [resolvable:$false] %s882_s23 }
 0x15b   : > { %v454_v38 = vadd.f32 %v706_v20, %v453_v36  ;;  %s884_s29 = scalar_lea.vmem %s883_s23, 4096  ;;  %p885_p13 = scmp.lt.s32.totalorder %s1232_s26, %s883_s23 }
 0x15c   : > { %p880_p8 = pnand %p879_p6, %p1104_p11  ;;  %p886_p3 = scmp.lt.s32.totalorder %s884_s29, %s878_s27 }
 0x15e   : > { %p881_p9 = pneg %p880_p8  ;;  %p887_p7 = por %p886_p3, %p885_p13 }
 0x160   : > { %p888_p10 = pnand %p887_p7, %p881_p9 }
 0x162   : > { %891 = shalt.err (!%p888_p10)
}
 0x163   : > { %s892_s30 = scalar_lea.hbm %s1229_s25, 2048  ;;  %s896_s10 = scalar_lea.hbm %s1327_s2, 4096 }
 0x164   : > { %p893_p1 = scmp.ne.s32.totalorder %s1229_s25, %s892_s30  ;;  %p897_p12 = scmp.lt.u32.totalorder %s1229_s25, %s1327_s2 }
 0x165   : > { %p898_p2 = scmp.lt.u32.totalorder %s896_s10, %s892_s30  ;;  %p900_p6 = scmp.lt.u32.totalorder %s892_s30, %s1229_s25 }
 0x166   : > { %p894_p0 = pnand %p893_p1, %p1104_p11 }
 0x167   : > { %p899_p4 = por %p898_p2, %p897_p12 }
 0x168   : > { %p895_p5 = pneg %p894_p0 }
 0x169   : > { %p901_p8 = por %p900_p6, %p899_p4 }
 0x16b   : > { %p902_p9 = pnand %p901_p8, %p895_p5 }
 0x16d   : > { %905 = shalt.err (!%p902_p9)
}
 0x16e   : > { %s986_s20 = smov 128   ;;  %s987_s8 = smov 8   ;;  %v455_v41 = vadd.f32 %v454_v38, %v384_v26  ;;  %v477_v42 = vmul.f32 %v384_v26, %v384_v26  ;;  %v490_v43 = vadd.f32 %v489_v40, %v475_v37  ;;  %v478_v45 = vmul.f32 %v387_v30, %v387_v30 }
 0x16f   : > { %741 = dma.vmem_to_hbm [thread:$0]  (%p1104_p11), %s1232_s26, 2048, %s1229_s25, %s516_s5, %s986_s20, %s986_s20, %s987_s8   ;;  %v479_v48 = vmul.f32 %v1200_v24, %v1200_v24  ;;  %v480_v51 = vmul.f32 %v710_v28, %v710_v28  ;;  %v481_v54 = vmul.f32 %v1185_v19, %v1185_v19  ;;  %v482_v57 = vmul.f32 %v1195_v23, %v1195_v23 }
 0x170   : > { %v456_v44 = vadd.f32 %v455_v41, %v387_v30  ;;  %v491_v46 = vadd.f32 %v490_v43, %v476_v39  ;;  %v483_v60 = vmul.f32 %v1178_v17, %v1178_v17  ;;  %v484_v63 = vmul.f32 %v1190_v21, %v1190_v21  ;;  %s988_s21 = smov [#allocation8]   ;;  %p1344_p13 = scmp.eq.s32.totalorder %s1030_s16, 1 }
 0x171   : > { %v485_v2 = vmul.f32 %v1208_v27, %v1208_v27  ;;  %v486_v5 = vmul.f32 %v1218_v31, %v1218_v31  ;;  %v487_v8 = vmul.f32 %v1202_v25, %v1202_v25  ;;  %v488_v11 = vmul.f32 %v1213_v29, %v1213_v29  ;;  %s543_s6 = sshll.u32 %s988_s21, 4  ;;  %s544_s6 = int_to_ptr.vmem [resolvable:$true] %s543_s6 }
 0x172   : > { %v457_v47 = vadd.f32 %v1200_v24, %v456_v44  ;;  %v492_v49 = vadd.f32 %v491_v46, %v477_v42  ;;  %vm510_vm0 = vcmask 1040384   ;;  %s906_s9 = scalar_lea.vmem %s544_s6, 32  ;;  %p913_p10 = scmp.lt.s32.totalorder %s544_s6, %s544_s6 }
 0x173   : > { %p907_p11 = scmp.ne.s32.totalorder %s544_s6, %s906_s9  ;;  %p914_p1 = scmp.lt.s32.totalorder %s906_s9, %s906_s9 }
 0x174   : > { %v458_v50 = vadd.f32 %v710_v28, %v457_v47  ;;  %v493_v52 = vadd.f32 %v492_v49, %v478_v45 }
 0x175   : > { %p908_p3 = pnand %p907_p11, %p1344_p13  ;;  %p915_p0 = por %p914_p1, %p913_p10 }
 0x176   : > { %v459_v53 = vadd.f32 %v458_v50, %v1185_v19  ;;  %v494_v55 = vadd.f32 %v493_v52, %v479_v48 }
 0x177   : > { %p909_p7 = pneg %p908_p3 }
 0x178   : > { %v460_v56 = vadd.f32 %v459_v53, %v1195_v23  ;;  %v495_v58 = vadd.f32 %v494_v55, %v480_v51 }
 0x179   : > { %p916_p5 = pnand %p915_p0, %p909_p7 }
 0x17a   : > { %v461_v59 = vadd.f32 %v1178_v17, %v460_v56  ;;  %v496_v61 = vadd.f32 %v495_v58, %v481_v54 }
 0x17c   : > { %v462_v62 = vadd.f32 %v1190_v21, %v461_v59  ;;  %v497_v0 = vadd.f32 %v496_v61, %v482_v57 }
 0x17e   : > { %v463_v1 = vadd.f32 %v462_v62, %v1208_v27  ;;  %v498_v3 = vadd.f32 %v497_v0, %v483_v60  ;;  %v512_v27 = vld [vmem:[#allocation8] sm:$0x3] }
 0x180   : > { %v464_v4 = vadd.f32 %v463_v1, %v1218_v31  ;;  %v499_v6 = vadd.f32 %v498_v3, %v484_v63 }
 0x182   : > { %v465_v7 = vadd.f32 %v1202_v25, %v464_v4  ;;  %v500_v9 = vadd.f32 %v499_v6, %v485_v2 }
 0x184   : > { %v466_v10 = vadd.f32 %v1213_v29, %v465_v7  ;;  %v501_v12 = vadd.f32 %v500_v9, %v486_v5 }
 0x186   : > { %v467_v13 = vrot.slane %v466_v10, 4  ;;  %v502_v14 = vadd.f32 %v501_v12, %v487_v8 }
 0x188   : > { %v468_v15 = vadd.f32 %v467_v13, %v466_v10  ;;  %v503_v16 = vadd.f32 %v502_v14, %v488_v11 }
 0x18a   : > { %v469_v17 = vrot.slane %v468_v15, 2  ;;  %v504_v18 = vrot.slane %v503_v16, 4 }
 0x18c   : > { %v470_v19 = vadd.f32 %v469_v17, %v468_v15  ;;  %v505_v20 = vadd.f32 %v504_v18, %v503_v16 }
 0x18e   : > { %v471_v21 = vrot.slane %v470_v19, 1  ;;  %v506_v22 = vrot.slane %v505_v20, 2 }
 0x190   : > { %v507_v23 = vadd.f32 %v506_v22, %v505_v20  ;;  %v472_v24 = vadd.f32 %v471_v21, %v470_v19 }
 0x192   : > { %v508_v25 = vrot.slane %v507_v23, 1 }
 0x194   : > { %v509_v26 = vadd.f32 %v508_v25, %v507_v23 }
 0x196   : > { %v511_v28 = vsel %vm510_vm0, %v472_v24, %v509_v26 }
 0x197   : > { %v513_v29 = vadd.f32 %v512_v27, %v511_v28 }
 0x199   : > { %514 = vst [vmem:[#allocation8] sm:$0x3] %v513_v29 }
 0x19a   : > { %919 = shalt.err (!%p916_p5)
}
 0x19b   : > { %s920_s26 = scalar_lea.hbm %s1328_s3, 32  ;;  %p1345_p2 = pmov %p1344_p13 }
 0x19c   : > { %p921_p12 = scmp.ne.s32.totalorder %s1328_s3, %s920_s26  ;;  %p926_p8 = scmp.lt.u32.totalorder %s920_s26, %s1328_s3 }
 0x19e   : > { %p922_p4 = pnand %p921_p12, %p1345_p2 }
 0x1a0   : > { %p923_p6 = pneg %p922_p4 }
 0x1a2   : > { %p928_p9 = pnand %p926_p8, %p923_p6 }
 0x1a4   : > { %931 = shalt.err (!%p928_p9)
}
 0x1a5   : > { %p1346_p11 = pmov %p1345_p2  ;;  %p1347_p13 = pmov %p1345_p2 }
 0x1a7   : > { %743 = dma.vmem_to_hbm [thread:$0]  (%p1346_p11), %s544_s6, 32, %s1328_s3, [#allocation9]  }
 0x1a8   : > { %957 = dma.done.wait (%p1347_p13), [#allocation9], 32   ;;  %p1348_p3 = pmov %p1345_p2 }
 0x1aa   : > { %959 = vsyncadd (%p1348_p3), [#allocation9], 4294967264 }
 0x1ab PF: > { %s559_s22 = sand.u32 1, %s966_s12   ;;  %p1349_p7 = scmp.ne.s32.totalorder %s1333_s19, 0 }
 0x1ac   : > { %p1350_p10 = scmp.ge.s32.totalorder %s978_s15, 2  ;;  %s560_s7 = scalar_lea.sflag [#allocation4], %s559_s22 }
 0x1ae   : > { %p756_p1 = pnand %p1350_p10, %p1349_p7 }
 0x1b0   : > { %961 = dma.done.wait (!%p756_p1), %s560_s7, 2048  }
 0x1b1   : > { %963 = vsyncadd (!%p756_p1), %s560_s7, 4294965248  ;;  %p19_p0 = scmp.ge.s32.totalorder %s1066_s24, 4   ;;  %s1351_s12 = smov %s970_s13 }
 0x1b2   : > { %s1352_s13 = smov %s974_s14  ;;  %s1353_s14 = smov %s1100_s17 }
 0x1b3   : > { %s1354_s15 = smov %s1066_s24  ;;  %21 = sbr.rel (!%p19_p0) target bundleno = 7 (0x7), region = 89 }
 0x1ba   :  { %565 = vsyncpa [#allocation3], 1 }
 0x1bb   :  { %567 = vsyncpa [#allocation3 + $0x1], 1 }
 0x1bc   :  { %568 = vsyncpa [#allocation6], 1 }
 0x1bd   :  { %569 = vsyncpa [#allocation4], 1 }
 0x1be   :  { %571 = vsyncpa [#allocation4 + $0x1], 1 }
 0x1bf   :  { %572 = vsyncpa [#allocation9], 1 }

</bundles_post_ra>
